<compile_context>
chip_gen: v7x
topology: tpu7x:2x2x1
jax: 0.10.0
libtpu: 0.0.40
codegen_flags: <defaults>
</compile_context>

<pallas_src>
import functools
import math

import jax
import jax.numpy as jnp
from jax import lax
from jax.experimental import pallas as pl
from jax.experimental.pallas import tpu as pltpu

LANE = 128
MAX_TILE_ROWS = 512   # 512x128 f32 tile = 256 KiB/buffer; safe on v5e/v6e/v7x VMEM budgets.


def _cdiv(a, b):
    return (a + b - 1) // b


def _fused_bce_sum_kernel(c_ref, g_ref, e_ref, out_ref, acc_ref, *,
                          y_real, y_fake, n, num_tiles, tiles_per_split, tile_rows):
    """Accumulate sum over valid elements of BCE(c,y_real)+BCE(g,y_fake)+BCE(e,y_fake)."""
    s = pl.program_id(0)   # split axis (megacore-parallel on v7x)
    t = pl.program_id(1)   # tile axis (reduction)

    @pl.when(t == 0)
    def _():
        acc_ref[...] = jnp.zeros_like(acc_ref)

    def bce(x_tile, y):
        x = x_tile.astype(jnp.float32)
        # Numerically stable BCEWithLogits (same formula PyTorch uses):
        #   loss = max(x, 0) - x*y + log(1 + exp(-|x|))
        return jnp.maximum(x, 0.0) - x * y + jnp.log1p(jnp.exp(-jnp.abs(x)))

    loss = bce(c_ref[...], y_real) + bce(g_ref[...], y_fake) + bce(e_ref[...], y_fake)

    # In-kernel validity mask: global element index vs. true element count. Handles both
    # the ragged last tile and the (clamped) duplicate tile of an over-provisioned split.
    g_raw = s * tiles_per_split + t
    g_clamped = jnp.minimum(g_raw, num_tiles - 1)   # mirrors the index_map clamp
    base = g_clamped * (tile_rows * LANE)
    row_ids = lax.broadcasted_iota(jnp.int32, (tile_rows, LANE), 0)
    lane_ids = lax.broadcasted_iota(jnp.int32, (tile_rows, LANE), 1)
    elem = base + row_ids * LANE + lane_ids
    valid = jnp.logical_and(elem < n, g_raw < num_tiles)

    acc_ref[...] += jnp.where(valid, loss, 0.0)

    # Cross-lane reduce + scalar store only once per split (not per grid step).
    @pl.when(t == pl.num_programs(1) - 1)
    def _():
        out_ref[...] = jnp.sum(acc_ref[...]).reshape(1, 1)


def adversarial_loss(cartoon, generated_f, edge_f,
                     cartoon_label=1.0, fake_label=0.0):
    """Sum of three mean-reduced BCEWithLogits losses (CartoonGAN AdversialLoss.forward).

    `cartoon_label` / `fake_label` are the constant fill values of the label tensors
    (torch.ones(...) / torch.zeros(...) in the reference module) and are baked into the
    kernel, so no label tensor is streamed from HBM.
    """
    # TODO(synk): non-constant (per-element) label tensors would need a label-streaming
    # variant; the module's ones/zeros labels are handled as baked scalars here.
    assert cartoon.shape == generated_f.shape == edge_f.shape, \
        (cartoon.shape, generated_f.shape, edge_f.shape)
    n = math.prod(cartoon.shape)

    def as_rows(x):
        x = x.reshape(-1)
        rem = n % LANE
        if rem:
            # Only hit when numel is not a multiple of 128; the in-kernel mask skips the tail.
            x = jnp.pad(x, (0, LANE - rem))
        return x.reshape(-1, LANE)

    c2, g2, e2 = as_rows(cartoon), as_rows(generated_f), as_rows(edge_f)
    rows = c2.shape[0]

    tile_rows = rows if rows <= MAX_TILE_ROWS else MAX_TILE_ROWS
    num_tiles = _cdiv(rows, tile_rows)
    num_splits = 2 if num_tiles >= 2 else 1        # 2 TensorCores on v7x; serial elsewhere
    tiles_per_split = _cdiv(num_tiles, num_splits)

    kernel = functools.partial(
        _fused_bce_sum_kernel,
        y_real=float(cartoon_label), y_fake=float(fake_label),
        n=n, num_tiles=num_tiles, tiles_per_split=tiles_per_split,
        tile_rows=tile_rows)

    def tile_map(s, t):
        return (jnp.minimum(s * tiles_per_split + t, num_tiles - 1), 0)

    in_spec = pl.BlockSpec((tile_rows, LANE), tile_map)
    itemsize = jnp.dtype(cartoon.dtype).itemsize

    partial_sums = pl.pallas_call(
        kernel,
        out_shape=jax.ShapeDtypeStruct((num_splits, 1), jnp.float32),
        grid_spec=pltpu.PrefetchScalarGridSpec(
            num_scalar_prefetch=0,
            grid=(num_splits, tiles_per_split),
            in_specs=[in_spec, in_spec, in_spec],
            out_specs=pl.BlockSpec((1, 1), lambda s, t: (s, 0)),
            scratch_shapes=[pltpu.VMEM((tile_rows, LANE), jnp.float32)],
        ),
        compiler_params=pltpu.CompilerParams(
            dimension_semantics=("parallel", "arbitrary")),
        cost_estimate=pl.CostEstimate(
            flops=6 * 3 * n,
            transcendentals=2 * 3 * n,
            bytes_accessed=3 * n * itemsize + 4 * num_splits),
    )(c2, g2, e2)

    # Sum of three means (each over n elements) == total masked sum / n.
    return jnp.sum(partial_sums) / jnp.float32(n)


def _reference(cartoon, generated_f, edge_f, cartoon_labels, fake_labels):
    def bce(x, y):
        x = x.astype(jnp.float32)
        y = y.astype(jnp.float32)
        l = jnp.maximum(x, 0.0) - x * y + jnp.log1p(jnp.exp(-jnp.abs(x)))
        return jnp.mean(l)
    return bce(cartoon, cartoon_labels) + bce(generated_f, fake_labels) \
        + bce(edge_f, fake_labels)


if __name__ == "__main__":
    # PatchGAN-style discriminator logits, NCHW: (B, C, H, W) = (2, 1, 16, 16)
    shape = (2, 1, 16, 16)
    key = jax.random.PRNGKey(0)
    k1, k2, k3 = jax.random.split(key, 3)

    cartoon = jax.random.normal(k1, shape, dtype=jnp.float32)
    generated_f = jax.random.normal(k2, shape, dtype=jnp.float32)
    edge_f = jax.random.normal(k3, shape, dtype=jnp.float32)

    # __init__ "parameters": real labels = ones, fake labels = zeros (constant fills).
    cartoon_labels = jnp.ones(shape, dtype=jnp.float32)
    fake_labels = jnp.zeros(shape, dtype=jnp.float32)

    out = adversarial_loss(cartoon, generated_f, edge_f,
                           cartoon_label=1.0, fake_label=0.0)
    out = jax.block_until_ready(out)

    ref = _reference(cartoon, generated_f, edge_f, cartoon_labels, fake_labels)
    assert jnp.allclose(out, ref, rtol=1e-5, atol=1e-5), (out, ref)

    print("KERNEL_OK")
</pallas_src>

<mosaic_0001>
module attributes {stable_mosaic.version = 11 : i64} {
  func.func @_fused_bce_sum_kernel(%arg0: i32, %arg1: i32, %arg2: memref<4x128xf32, #tpu.memory_space<vmem>>, %arg3: memref<4x128xf32, #tpu.memory_space<vmem>>, %arg4: memref<4x128xf32, #tpu.memory_space<vmem>>, %arg5: memref<1x1xf32, #tpu.memory_space<vmem>>, %arg6: memref<4x128xf32, #tpu.memory_space<vmem>>) attributes {dimension_semantics = [#tpu.dimension_semantics<parallel>, #tpu.dimension_semantics<arbitrary>], iteration_bounds = array<i64: 1, 1>, scalar_prefetch = 0 : i64, scratch_operands = 1 : i64, tpu.core_type = #tpu.core_type<tc>, window_params = [{transform_indices = @transform_0, window_bounds = array<i64: 4, 128>}, {transform_indices = @transform_1, window_bounds = array<i64: 4, 128>}, {transform_indices = @transform_2, window_bounds = array<i64: 4, 128>}, {transform_indices = @transform_3, window_bounds = array<i64: 1, 1>}]} {
    %c0_i32 = arith.constant 0 : i32
    %0 = arith.cmpi eq, %arg1, %c0_i32 : i32
    %1 = arith.extui %0 : i1 to i32
    %c0_i32_0 = arith.constant 0 : i32
    %2 = arith.cmpi ne, %1, %c0_i32_0 : i32
    scf.if %2 {
      %cst_24 = arith.constant 0.000000e+00 : f32
      %65 = vector.broadcast %cst_24 : f32 to vector<4x128xf32>
      %c0_25 = arith.constant 0 : index
      %c0_26 = arith.constant 0 : index
      %66 = vector.load %arg6[%c0_25, %c0_26] : memref<4x128xf32, #tpu.memory_space<vmem>>, vector<4x128xf32>
      tpu.vector_store %arg6[%c0_25, %c0_26], %65 {strides = array<i32>} : memref<4x128xf32, #tpu.memory_space<vmem>>, vector<4x128xf32>,
    } else {
    }
    %c0 = arith.constant 0 : index
    %c0_1 = arith.constant 0 : index
    %3 = vector.load %arg2[%c0, %c0_1] : memref<4x128xf32, #tpu.memory_space<vmem>>, vector<4x128xf32>
    %cst = arith.constant 0.000000e+00 : f32
    %4 = vector.broadcast %cst : f32 to vector<4x128xf32>
    %5 = arith.maximumf %3, %4 : vector<4x128xf32>
    %cst_2 = arith.constant 1.000000e+00 : f32
    %6 = vector.broadcast %cst_2 : f32 to vector<4x128xf32>
    %7 = arith.mulf %3, %6 : vector<4x128xf32>
    %8 = arith.subf %5, %7 : vector<4x128xf32>
    %9 = math.absf %3 : vector<4x128xf32>
    %cst_3 = arith.constant 0.000000e+00 : f32
    %10 = vector.broadcast %cst_3 : f32 to vector<4x128xf32>
    %11 = arith.subf %10, %9 : vector<4x128xf32>
    %12 = math.exp %11 : vector<4x128xf32>
    %13 = math.log1p %12 : vector<4x128xf32>
    %14 = arith.addf %8, %13 : vector<4x128xf32>
    %c0_4 = arith.constant 0 : index
    %c0_5 = arith.constant 0 : index
    %15 = vector.load %arg3[%c0_4, %c0_5] : memref<4x128xf32, #tpu.memory_space<vmem>>, vector<4x128xf32>
    %cst_6 = arith.constant 0.000000e+00 : f32
    %16 = vector.broadcast %cst_6 : f32 to vector<4x128xf32>
    %17 = arith.maximumf %15, %16 : vector<4x128xf32>
    %cst_7 = arith.constant 0.000000e+00 : f32
    %18 = vector.broadcast %cst_7 : f32 to vector<4x128xf32>
    %19 = arith.mulf %15, %18 : vector<4x128xf32>
    %20 = arith.subf %17, %19 : vector<4x128xf32>
    %21 = math.absf %15 : vector<4x128xf32>
    %cst_8 = arith.constant 0.000000e+00 : f32
    %22 = vector.broadcast %cst_8 : f32 to vector<4x128xf32>
    %23 = arith.subf %22, %21 : vector<4x128xf32>
    %24 = math.exp %23 : vector<4x128xf32>
    %25 = math.log1p %24 : vector<4x128xf32>
    %26 = arith.addf %20, %25 : vector<4x128xf32>
    %27 = arith.addf %14, %26 : vector<4x128xf32>
    %c0_9 = arith.constant 0 : index
    %c0_10 = arith.constant 0 : index
    %28 = vector.load %arg4[%c0_9, %c0_10] : memref<4x128xf32, #tpu.memory_space<vmem>>, vector<4x128xf32>
    %cst_11 = arith.constant 0.000000e+00 : f32
    %29 = vector.broadcast %cst_11 : f32 to vector<4x128xf32>
    %30 = arith.maximumf %28, %29 : vector<4x128xf32>
    %cst_12 = arith.constant 0.000000e+00 : f32
    %31 = vector.broadcast %cst_12 : f32 to vector<4x128xf32>
    %32 = arith.mulf %28, %31 : vector<4x128xf32>
    %33 = arith.subf %30, %32 : vector<4x128xf32>
    %34 = math.absf %28 : vector<4x128xf32>
    %cst_13 = arith.constant 0.000000e+00 : f32
    %35 = vector.broadcast %cst_13 : f32 to vector<4x128xf32>
    %36 = arith.subf %35, %34 : vector<4x128xf32>
    %37 = math.exp %36 : vector<4x128xf32>
    %38 = math.log1p %37 : vector<4x128xf32>
    %39 = arith.addf %33, %38 : vector<4x128xf32>
    %40 = arith.addf %27, %39 : vector<4x128xf32>
    %c1_i32 = arith.constant 1 : i32
    %41 = arith.muli %arg0, %c1_i32 : i32
    %42 = arith.addi %41, %arg1 : i32
    %c0_i32_14 = arith.constant 0 : i32
    %43 = arith.minsi %42, %c0_i32_14 : i32
    %c512_i32 = arith.constant 512 : i32
    %44 = arith.muli %43, %c512_i32 : i32
    %45 = tpu.iota {dimensions = array<i32: 0>} : vector<4x128xi32>
    %46 = tpu.iota {dimensions = array<i32: 1>} : vector<4x128xi32>
    %c128_i32 = arith.constant 128 : i32
    %47 = vector.broadcast %c128_i32 : i32 to vector<4x128xi32>
    %48 = arith.muli %45, %47 : vector<4x128xi32>
    %49 = vector.broadcast %44 : i32 to vector<4x128xi32>
    %50 = arith.addi %49, %48 : vector<4x128xi32>
    %51 = arith.addi %50, %46 : vector<4x128xi32>
    %c512_i32_15 = arith.constant 512 : i32
    %52 = vector.broadcast %c512_i32_15 : i32 to vector<4x128xi32>
    %53 = arith.cmpi slt, %51, %52 : vector<4x128xi32>
    %c1_i32_16 = arith.constant 1 : i32
    %54 = arith.cmpi slt, %42, %c1_i32_16 : i32
    %55 = vector.broadcast %54 : i1 to vector<4x128xi1>
    %56 = arith.andi %53, %55 : vector<4x128xi1>
    %c0_17 = arith.constant 0 : index
    %c0_18 = arith.constant 0 : index
    %57 = vector.load %arg6[%c0_17, %c0_18] : memref<4x128xf32, #tpu.memory_space<vmem>>, vector<4x128xf32>
    %cst_19 = arith.constant 0.000000e+00 : f32
    %58 = vector.broadcast %cst_19 : f32 to vector<4x128xf32>
    %59 = arith.select %56, %40, %58 : vector<4x128xi1>, vector<4x128xf32>
    %60 = arith.addf %57, %59 : vector<4x128xf32>
    %c0_20 = arith.constant 0 : index
    %c0_21 = arith.constant 0 : index
    %61 = vector.load %arg6[%c0_20, %c0_21] : memref<4x128xf32, #tpu.memory_space<vmem>>, vector<4x128xf32>
    tpu.vector_store %arg6[%c0_20, %c0_21], %60 {strides = array<i32>} : memref<4x128xf32, #tpu.memory_space<vmem>>, vector<4x128xf32>,
    %c0_i32_22 = arith.constant 0 : i32
    %62 = arith.cmpi eq, %arg1, %c0_i32_22 : i32
    %63 = arith.extui %62 : i1 to i32
    %c0_i32_23 = arith.constant 0 : i32
    %64 = arith.cmpi ne, %63, %c0_i32_23 : i32
    scf.if %64 {
      %c0_24 = arith.constant 0 : index
      %c0_25 = arith.constant 0 : index
      %65 = vector.load %arg6[%c0_24, %c0_25] : memref<4x128xf32, #tpu.memory_space<vmem>>, vector<4x128xf32>
      %66 = vector.shape_cast %65 : vector<4x128xf32> to vector<1x4x128xf32>
      %cst_26 = arith.constant dense<0.000000e+00> : vector<1xf32>
      %67 = vector.multi_reduction <add>, %66, %cst_26 [1, 2] : vector<1x4x128xf32> to vector<1xf32>
      %68 = vector.shape_cast %67 : vector<1xf32> to vector<1x1x1xf32>
      %69 = vector.extract %68[0, 0, 0] : f32 from vector<1x1x1xf32>
      %70 = vector.broadcast %69 : f32 to vector<1x1xf32>
      %c0_27 = arith.constant 0 : index
      %c0_28 = arith.constant 0 : index
      %71 = vector.load %arg5[%c0_27, %c0_28] : memref<1x1xf32, #tpu.memory_space<vmem>>, vector<1x1xf32>
      tpu.vector_store %arg5[%c0_27, %c0_28], %70 {strides = array<i32>} : memref<1x1xf32, #tpu.memory_space<vmem>>, vector<1x1xf32>,
    } else {
    }
    return
  }
  func.func @transform_0(%arg0: i32, %arg1: i32) -> (i32, i32) {
    %c1_i32 = arith.constant 1 : i32
    %0 = arith.muli %arg0, %c1_i32 : i32
    %1 = arith.addi %0, %arg1 : i32
    %c0_i32 = arith.constant 0 : i32
    %2 = arith.minsi %1, %c0_i32 : i32
    %c0_i32_0 = arith.constant 0 : i32
    %c0_i32_1 = arith.constant 0 : i32
    return %2, %c0_i32_0 : i32, i32
  }
  func.func @transform_1(%arg0: i32, %arg1: i32) -> (i32, i32) {
    %c1_i32 = arith.constant 1 : i32
    %0 = arith.muli %arg0, %c1_i32 : i32
    %1 = arith.addi %0, %arg1 : i32
    %c0_i32 = arith.constant 0 : i32
    %2 = arith.minsi %1, %c0_i32 : i32
    %c0_i32_0 = arith.constant 0 : i32
    %c0_i32_1 = arith.constant 0 : i32
    return %2, %c0_i32_0 : i32, i32
  }
  func.func @transform_2(%arg0: i32, %arg1: i32) -> (i32, i32) {
    %c1_i32 = arith.constant 1 : i32
    %0 = arith.muli %arg0, %c1_i32 : i32
    %1 = arith.addi %0, %arg1 : i32
    %c0_i32 = arith.constant 0 : i32
    %2 = arith.minsi %1, %c0_i32 : i32
    %c0_i32_0 = arith.constant 0 : i32
    %c0_i32_1 = arith.constant 0 : i32
    return %2, %c0_i32_0 : i32, i32
  }
  func.func @transform_3(%arg0: i32, %arg1: i32) -> (i32, i32) {
    %c0_i32 = arith.constant 0 : i32
    %c0_i32_0 = arith.constant 0 : i32
    return %arg0, %c0_i32 : i32, i32
  }
}

</mosaic_0001>

<bundles_post_ra>
// kernel: tpu_custom_call.1
= control target key start
LH: loop header
LB: loop body
LE: loop exit
PB: predicated region body
PF: predicated region fallthrough
CT: control target
= control target key end

     0   :  { %8 = vsyncpa [#allocation4], 0  ;;  %s361_s0 = inlined_call_operand.hbm [shape: f32[4,128], index: 0, kind: input, shape index: {}]   ;;  %s362_s1 = inlined_call_operand.hbm [shape: f32[4,128], index: 1, kind: input, shape index: {}]   ;;  %s363_s2 = inlined_call_operand.vmem [shape: f32[4,128], index: 2, kind: input, shape index: {}]   ;;  %s364_s3 = inlined_call_operand.hbm [shape: f32[1,1], index: 3, kind: output, shape index: {}]  }
   0x1   :  { %9 = vsyncpa [#allocation7], 0 }
   0x2   :  { %10 = vsyncpa [#allocation5], 0  ;;  %s298_s12 = smov [#allocation3]   ;;  %s299_s14 = smov [#allocation6]  }
   0x3   :  { %s22_s13 = sshll.u32 %s298_s12, 4  ;;  %s37_s15 = sshll.u32 %s299_s14, 4  ;;  %s23_s13 = int_to_ptr.vmem [resolvable:$true] %s22_s13  ;;  %s38_s15 = int_to_ptr.vmem [resolvable:$true] %s37_s15 }
   0x4   :  { %s226_s18 = scalar_lea.hbm %s361_s0, 64 }
   0x5   :  { %p227_p0 = scmp.ne.s32.totalorder %s361_s0, %s226_s18  ;;  %p230_p1 = scmp.lt.u32.totalorder %s226_s18, %s361_s0 }
   0x7   :  { %p232_p2 = pnand %p230_p1, %p227_p0 }
   0x9   :  { %235 = shalt.err (!%p232_p2)
}
   0xa   :  { %s236_s23 = scalar_lea.vmem %s23_s13, 64  ;;  %p241_p4 = scmp.lt.s32.totalorder %s23_s13, %s23_s13 }
   0xb   :  { %p237_p3 = scmp.ne.s32.totalorder %s23_s13, %s236_s23  ;;  %p242_p5 = scmp.lt.s32.totalorder %s236_s23, %s236_s23 }
   0xd   :  { %p243_p6 = por %p242_p5, %p241_p4 }
   0xf   :  { %p244_p7 = pnand %p243_p6, %p237_p3 }
  0x11   :  { %247 = shalt.err (!%p244_p7)
}
  0x12   :  { %25 = dma.hbm_to_vmem [thread:$0]  %s361_s0, 64, %s23_s13, [#allocation4]  }
  0x13   :  { %s248_s28 = scalar_lea.hbm %s362_s1, 64 }
  0x14   :  { %p249_p8 = scmp.ne.s32.totalorder %s362_s1, %s248_s28  ;;  %p252_p9 = scmp.lt.u32.totalorder %s248_s28, %s362_s1 }
  0x16   :  { %p254_p10 = pnand %p252_p9, %p249_p8 }
  0x18   :  { %257 = shalt.err (!%p254_p10)
}
  0x19   :  { %s258_s6 = scalar_lea.vmem %s38_s15, 64  ;;  %p263_p12 = scmp.lt.s32.totalorder %s38_s15, %s38_s15 }
  0x1a   :  { %p259_p11 = scmp.ne.s32.totalorder %s38_s15, %s258_s6  ;;  %p264_p13 = scmp.lt.s32.totalorder %s258_s6, %s258_s6 }
  0x1c   :  { %p265_p0 = por %p264_p13, %p263_p12 }
  0x1e   :  { %p266_p1 = pnand %p265_p0, %p259_p11 }
  0x20   :  { %269 = shalt.err (!%p266_p1)
}
  0x21   :  { %40 = dma.hbm_to_vmem [thread:$0]  %s362_s1, 64, %s38_s15, [#allocation7]  }
  0x22   :  { %292 = dma.done.wait [#allocation4], 64  }
  0x23   :  { %293 = vsyncadd [#allocation4], 4294967232 }
  0x24   :  { %294 = dma.done.wait [#allocation7], 64  }
  0x25   :  { %295 = vsyncadd [#allocation7], 4294967232  ;;  %v300_v0 = vmov 0.0   ;;  %v87_v1 = vld [vmem:[#allocation3] sm:$0xf]  ;;  %v146_v21 = vlaneseq  ;;  %vm168_vm4 = vcmask 1043456  }
  0x26   :  { %86 = vst [vmem:[#allocation2] sm:$0xf] %v300_v0  ;;  %v104_v2 = vld [vmem:[#allocation6] sm:$0xf]  ;;  %v123_v3 = vld [vmem:[%s363_s2] sm:$0xf] }
  0x27   :  { %v90_v4 = vand.u32 2147483647, %v87_v1  ;;  %v108_v5 = vand.u32 2147483647, %v104_v2  ;;  %v127_v6 = vand.u32 2147483647, %v123_v3 }
  0x28   :  { %v88_v24 = vmax.f32 %v87_v1, 0.0  ;;  %v147_v27 = vshrl.u32 %v146_v21, 7  ;;  %v105_v28 = vmax.f32 %v104_v2, 0.0  ;;  %v106_v29 = vmul.f32 0.0, %v104_v2  ;;  %s301_s1 = smov [#allocation8]  }
  0x29   :  { %v91_v7 = vsub.f32 0.0, %v90_v4  ;;  %v109_v8 = vsub.f32 0.0, %v108_v5  ;;  %v128_v9 = vsub.f32 0.0, %v127_v6  ;;  %v124_v32 = vmax.f32 %v123_v3, 0.0  ;;  %s188_s2 = sshll.u32 %s301_s1, 4  ;;  %s189_s2 = int_to_ptr.vmem [resolvable:$true] %s188_s2 }
  0x2a   :  { %v125_v33 = vmul.f32 0.0, %v123_v3  ;;  %v149_v36 = vand.u32 127, %v146_v21  ;;  %v89_v38 = vsub.f32 %v88_v24, %v87_v1  ;;  %v150_v40 = vmul.u32 128, %v147_v27  ;;  %s270_s11 = scalar_lea.vmem %s189_s2, 16  ;;  %s274_s12 = scalar_lea.vmem %s189_s2, 32 }
  0x2b   :  { %v92_v10 = vmul.f32 1.442695, %v91_v7  ;;  %v110_v11 = vmul.f32 1.442695, %v109_v8  ;;  %v129_v12 = vmul.f32 1.442695, %v128_v9  ;;  %v107_v43 = vsub.f32 %v105_v28, %v106_v29  ;;  %p271_p2 = scmp.ne.s32.totalorder %s189_s2, %s270_s11  ;;  %p275_p3 = scmp.lt.s32.totalorder %s189_s2, %s189_s2 }
  0x2c   :  { %v126_v47 = vsub.f32 %v124_v32, %v125_v33  ;;  %v153_v52 = vadd.s32 %v150_v40, %v149_v36  ;;  %vm180_vm5 = vcmask 0   ;;  %p276_p4 = scmp.lt.s32.totalorder %s274_s12, %s270_s11 }
  0x2d   :  { %214 = vpow2.f32 %v92_v10  ;;  %v160_v58 = vld [vmem:[#allocation2] sm:$0xf] }
  0x2e   :  { %216 = vpow2.f32 %v110_v11  ;;  %vm154_vm3 = vcmp.lt.s32.totalorder %v153_v52, 512  ;;  %p277_p5 = por %p276_p4, %p275_p3 }
  0x2f   :  { %218 = vpow2.f32 %v129_v12 }
  0x30   :  { %p278_p6 = pnand %p277_p5, %p271_p2 }
  0x37   :  { %v215_v13 = vpop.eup %214 }
  0x38   :  { %v217_v14 = vpop.eup %216  ;;  %v94_v15 = vadd.f32 1.0, %v215_v13  ;;  %v97_v19 = vmul.f32 -0.5, %v215_v13  ;;  %v100_v25 = vand.u32 2147483647, %v215_v13 }
  0x39   :  { %v219_v16 = vpop.eup %218  ;;  %v112_v17 = vadd.f32 1.0, %v217_v14  ;;  %v115_v20 = vmul.f32 -0.5, %v217_v14  ;;  %v118_v30 = vand.u32 2147483647, %v217_v14 }
  0x3a   :  { %220 = vlog2.f32 %v94_v15  ;;  %v131_v18 = vadd.f32 1.0, %v219_v16  ;;  %v134_v22 = vmul.f32 -0.5, %v219_v16  ;;  %v98_v23 = vadd.f32 1.0, %v97_v19 }
  0x3b   :  { %222 = vlog2.f32 %v112_v17  ;;  %v116_v26 = vadd.f32 1.0, %v115_v20  ;;  %v137_v34 = vand.u32 2147483647, %v219_v16  ;;  %vm101_vm0 = vcmp.lt.f32.partialorder %v100_v25, 0.0004427343 }
  0x3c   :  { %224 = vlog2.f32 %v131_v18  ;;  %v135_v31 = vadd.f32 1.0, %v134_v22  ;;  %v99_v35 = vmul.f32 %v215_v13, %v98_v23  ;;  %vm119_vm1 = vcmp.lt.f32.partialorder %v118_v30, 0.0004427343 }
  0x3d   :  { %v117_v39 = vmul.f32 %v217_v14, %v116_v26  ;;  %vm138_vm2 = vcmp.lt.f32.partialorder %v137_v34, 0.0004427343 }
  0x3e   :  { %v136_v44 = vmul.f32 %v219_v16, %v135_v31 }
  0x44   :  { %v221_v37 = vpop.eup %220 }
  0x45   :  { %v223_v41 = vpop.eup %222  ;;  %v96_v42 = vmul.f32 0.6931472, %v221_v37 }
  0x46   :  { %v225_v45 = vpop.eup %224  ;;  %v114_v46 = vmul.f32 0.6931472, %v223_v41 }
  0x47   :  { %v102_v48 = vsel %vm101_vm0, %v99_v35, %v96_v42  ;;  %v133_v49 = vmul.f32 0.6931472, %v225_v45 }
  0x48   :  { %v103_v50 = vadd.f32 %v102_v48, %v89_v38  ;;  %v120_v51 = vsel %vm119_vm1, %v117_v39, %v114_v46 }
  0x49   :  { %v121_v53 = vadd.f32 %v120_v51, %v107_v43  ;;  %v139_v54 = vsel %vm138_vm2, %v136_v44, %v133_v49 }
  0x4a   :  { %v140_v55 = vadd.f32 %v139_v54, %v126_v47 }
  0x4b   :  { %v122_v56 = vadd.f32 %v121_v53, %v103_v50 }
  0x4d   :  { %v141_v57 = vadd.f32 %v140_v55, %v122_v56 }
  0x4f   :  { %v161_v59 = vsel %vm154_vm3, %v141_v57, 0.0 }
  0x50   :  { %v162_v60 = vadd.f32 %v161_v59, %v160_v58 }
  0x52   :  { %163 = vst [vmem:[#allocation2] sm:$0xf] %v162_v60 }
  0x59   :  { %v167_v61 = vld [vmem:[#allocation2] sm:$0xf] }
  0x5a   :  { %v169_v62 = vsel %vm168_vm4, %v167_v61, 0.0 }
  0x5b   :  { %170 = vadd.xlane.f32.xlu0 %v169_v62 }
  0xe8   :  { %v171_v63 = vpop.xlane.xlu0 %170 }
  0xe9   :  { %v172_v0 = vrot.slane %v171_v63, 4 }
  0xeb   :  { %v173_v1 = vadd.f32 %v172_v0, %v171_v63 }
  0xed   :  { %v174_v2 = vrot.slane %v173_v1, 2 }
  0xef   :  { %v175_v3 = vadd.f32 %v174_v2, %v173_v1 }
  0xf1   :  { %v176_v4 = vrot.slane %v175_v3, 1 }
  0xf3   :  { %v177_v5 = vadd.f32 %v176_v4, %v175_v3 }
  0xf5   :  { %208 = vpush %v177_v5 }
 0x126   :  { %s209_s10 = spop %208 }
 0x127   :  { %v179_v6 = vstv %s209_s10 }
 0x128   :  { %181 = vst.msk [vmem:[#allocation8] sm:$0x1] %vm180_vm5, %v179_v6 }
 0x129   :  { %281 = shalt.err (!%p278_p6)
}
 0x12a   :  { %s282_s15 = scalar_lea.hbm %s364_s3, 16 }
 0x12b   :  { %p283_p7 = scmp.ne.s32.totalorder %s364_s3, %s282_s15  ;;  %p286_p8 = scmp.lt.u32.totalorder %s282_s15, %s364_s3 }
 0x12d   :  { %p288_p9 = pnand %p286_p8, %p283_p7 }
 0x12f   :  { %291 = shalt.err (!%p288_p9)
}
 0x130   :  { %191 = dma.vmem_to_hbm [thread:$0]  %s189_s2, 16, %s364_s3, [#allocation5]  }
 0x131   :  { %296 = dma.done.wait [#allocation5], 16  }
 0x132   :  { %297 = vsyncadd [#allocation5], 4294967280 }
 0x133   :  { %195 = vsyncpa [#allocation4], 1 }
 0x134   :  { %196 = vsyncpa [#allocation7], 1 }
 0x135   :  { %197 = vsyncpa [#allocation5], 1 }

</bundles_post_ra>
